<compile_context>
chip_gen: v5e
topology: v5e:2x2
jax: 0.10.0
libtpu: 0.0.40
codegen_flags: <defaults>
</compile_context>

<pallas_src>
import functools

import jax
import jax.numpy as jnp
from jax.experimental import pallas as pl
from jax.experimental.pallas import tpu as pltpu


def _rmsnorm_kernel(x_ref, gain_ref, o_ref, *, eps, inv_d):
    # Compute in float32 regardless of input dtype (matches the torch module).
    xf = x_ref[...].astype(jnp.float32)                  # (tile_rows, d_model)
    ss = jnp.sum(xf * xf, axis=-1, keepdims=True)        # (tile_rows, 1)
    inv = jax.lax.rsqrt(ss * inv_d + eps)                # EUP rsqrt
    g = gain_ref[...].astype(jnp.float32)                # (1, d_model)
    # Re-upcast from x_ref in the output expression so only one full-tile f32
    # value needs to be live across the reduction (VMEM-friendly on v7x); the
    # extra load/convert is hidden under the HBM DMA in this mem-bound kernel.
    o_ref[...] = (x_ref[...].astype(jnp.float32) * inv * g).astype(o_ref.dtype)


def _vmem_budget_bytes():
    """Per-TensorCore VMEM budget (conservatively clamped to 64 MiB)."""
    try:
        cap = int(pltpu.get_tpu_info().vmem_capacity_bytes)
    except Exception:
        cap = 64 << 20
    # On v7x the grid is sharded across 2 TCs with 64 MiB each; the query may
    # report chip-level capacity, so budget against the per-TC value.
    return min(cap, 64 << 20)


def _pick_tile_rows(n_rows, d_model, dtype_bytes, vmem_budget):
    """Row-tile size: byte-capped blocks, >=8 grid steps, sublane-aligned."""
    sublane = max(8, 32 // dtype_bytes)        # f32: 8, bf16: 16, int8/fp8: 32
    row_bytes = max(1, d_model * dtype_bytes)

    # (1) Per-block byte cap: the HBM roofline saturates around a few-hundred
    #     KiB to a few MiB per block; larger tiles only burn VMEM and shrink
    #     the grid.
    tile = max(sublane, (3 << 20) // row_bytes)

    # (2) Secondary VMEM bound: double-buffered in/out + ~3 f32 temporaries.
    per_row = d_model * (4 * dtype_bytes + 12)
    tile = min(tile, max(sublane, (vmem_budget // 2) // max(per_row, 1)))

    tile = min(tile, n_rows)

    # (3) Keep >= 8 grid steps (>= 4 per v7x TensorCore) when rows permit so
    #     BlockSpec double-buffering reaches steady state on every generation.
    target_steps = 8
    if n_rows >= target_steps * sublane:
        tile = min(tile, -(-n_rows // target_steps))

    # (4) Align to the dtype's native sublane packing.
    if n_rows >= sublane:
        tile = max(sublane, (tile // sublane) * sublane)
        tile = min(tile, n_rows)
    else:
        tile = n_rows  # full-extent block; allowed by the (8,128) rule.

    # (5) Prefer an even grid length so both v7x TensorCores get balanced work
    #     (including the ragged remainder block).
    if sublane < tile < n_rows:
        for cand in range(tile, sublane - 1, -sublane):
            if (-(-n_rows // cand)) % 2 == 0:
                tile = cand
                break

    return int(max(1, tile))


def rmsnorm(x, gain, eps=1e-8, *, tile_rows=None):
    """RMSNorm over the last axis of x, with per-feature gain."""
    orig_shape = x.shape
    d_model = orig_shape[-1]
    x2d = x.reshape(-1, d_model)
    n_rows = x2d.shape[0]
    dtype_bytes = jnp.dtype(x.dtype).itemsize

    vmem_budget = _vmem_budget_bytes()
    if tile_rows is None:
        tile_rows = _pick_tile_rows(n_rows, d_model, dtype_bytes, vmem_budget)
    tile_rows = int(min(tile_rows, n_rows))

    gain2d = gain.reshape(1, d_model)

    # No padding: Pallas handles the ragged last block (OOB output writes are
    # masked, and the reduction is per-row so padded rows can't contaminate
    # valid rows).
    grid = (pl.cdiv(n_rows, tile_rows),)

    # Only use a 3-deep input buffer when the byte cap forces very small
    # row-tiles at huge hidden sizes (keeps the DMA queue full on v7x).
    row_bytes = d_model * dtype_bytes
    use_triple_in = d_model >= 16384 and tile_rows * row_bytes < (2 << 20)
    in_buffers = 3 if use_triple_in else 2
    x_spec_kwargs = {"pipeline_mode": pl.Buffered(3)} if use_triple_in else {}
    x_in_spec = pl.BlockSpec((tile_rows, d_model), lambda i: (i, 0),
                             **x_spec_kwargs)

    # Scoped-VMEM limit sized to the actual pipeline footprint (+ headroom):
    # pipelined in/out buffers, three full-tile f32 temporaries, and the gain.
    needed = (
        (in_buffers + 2) * tile_rows * d_model * dtype_bytes
        + 3 * tile_rows * d_model * 4
        + 2 * d_model * 4
    )
    vmem_limit = int(min(vmem_budget * 3 // 4,
                         max(needed + (4 << 20), 32 << 20)))

    cost = pl.CostEstimate(
        flops=4 * n_rows * d_model,
        transcendentals=n_rows,
        bytes_accessed=2 * n_rows * d_model * dtype_bytes
        + d_model * jnp.dtype(gain.dtype).itemsize,
    )

    out = pl.pallas_call(
        functools.partial(_rmsnorm_kernel, eps=eps, inv_d=1.0 / d_model),
        out_shape=jax.ShapeDtypeStruct((n_rows, d_model), x.dtype),
        grid_spec=pltpu.PrefetchScalarGridSpec(
            num_scalar_prefetch=0,
            grid=grid,
            in_specs=[
                x_in_spec,
                # Constant block index -> the gain DMA is elided on revisits.
                pl.BlockSpec((1, d_model), lambda i: (0, 0)),
            ],
            out_specs=pl.BlockSpec((tile_rows, d_model), lambda i: (i, 0)),
        ),
        compiler_params=pltpu.CompilerParams(
            dimension_semantics=("parallel",),
            vmem_limit_bytes=vmem_limit,
        ),
        cost_estimate=cost,
    )(x2d, gain2d)

    return out.reshape(orig_shape)


def rmsnorm_ref(x, gain, eps=1e-8):
    """Pure-JAX reference mirroring the PyTorch forward."""
    input_dtype = x.dtype
    xf = x.astype(jnp.float32)
    variance = jnp.mean(xf * xf, axis=-1, keepdims=True)
    xf = xf * jax.lax.rsqrt(variance + eps)
    return (gain.astype(jnp.float32) * xf).astype(input_dtype)


if __name__ == "__main__":
    key = jax.random.PRNGKey(0)
    eps = 1e-8  # NOTE: the reference module's default (not the 1e-6 Llama one).

    # Case 1: small f32 input (batch=2, seq=8, d_model=32).
    batch, seq, d_model = 2, 8, 32
    kx, kx2, kx3 = jax.random.split(key, 3)
    x = jax.random.normal(kx, (batch, seq, d_model), dtype=jnp.float32)
    # Module initializes gain to ones; add a deterministic perturbation so the
    # gain broadcast is exercised.
    gain = jnp.ones((d_model,), dtype=jnp.float32) + 0.01 * jnp.arange(
        d_model, dtype=jnp.float32
    )

    out = jax.block_until_ready(rmsnorm(x, gain, eps))
    ref = rmsnorm_ref(x, gain, eps)
    assert out.shape == x.shape and out.dtype == x.dtype
    assert jnp.allclose(out, ref, atol=1e-5, rtol=1e-5), "f32 mismatch vs reference"

    # Case 2: ragged row count + bf16 input, exercising the partial last block
    # (no-pad path), bf16 sublane alignment, and the f32-compute/downcast path.
    xb = jax.random.normal(kx2, (3, 7, d_model), dtype=jnp.float32).astype(jnp.bfloat16)
    outb = jax.block_until_ready(rmsnorm(xb, gain, eps))
    refb = rmsnorm_ref(xb, gain, eps)
    assert outb.shape == xb.shape and outb.dtype == xb.dtype
    assert jnp.allclose(outb.astype(jnp.float32), refb.astype(jnp.float32),
                        atol=2e-2, rtol=2e-2), "bf16 mismatch vs reference"

    # Case 3: medium f32 input that produces a multi-step (>= 8) grid, to
    # exercise the pipelined / megacore-sharded path.
    d2 = 128
    xm = jax.random.normal(kx3, (4, 64, d2), dtype=jnp.float32)
    gm = jnp.ones((d2,), dtype=jnp.float32) + 0.005 * jnp.arange(d2, dtype=jnp.float32)
    outm = jax.block_until_ready(rmsnorm(xm, gm, eps))
    refm = rmsnorm_ref(xm, gm, eps)
    assert outm.shape == xm.shape and outm.dtype == xm.dtype
    assert jnp.allclose(outm, refm, atol=1e-5, rtol=1e-5), "multi-step mismatch"

    print("KERNEL_OK")
</pallas_src>

<mosaic_0001>
module attributes {stable_mosaic.version = 11 : i64} {
  func.func @_rmsnorm_kernel(%arg0: i32, %arg1: memref<16x32xf32, #tpu.memory_space<vmem>>, %arg2: memref<1x32xf32, #tpu.memory_space<vmem>>, %arg3: memref<16x32xf32, #tpu.memory_space<vmem>>) attributes {dimension_semantics = [#tpu.dimension_semantics<parallel>], iteration_bounds = array<i64: 1>, scalar_prefetch = 0 : i64, scratch_operands = 0 : i64, tpu.core_type = #tpu.core_type<tc>, window_params = [{transform_indices = @transform_0, window_bounds = array<i64: 16, 32>}, {pipeline_mode = #tpu.pipeline_mode<synchronous>, transform_indices = @transform_1, window_bounds = array<i64: 1, 32>}, {transform_indices = @transform_2, window_bounds = array<i64: 16, 32>}]} {
    %c0 = arith.constant 0 : index
    %c0_0 = arith.constant 0 : index
    %0 = vector.load %arg1[%c0, %c0_0] : memref<16x32xf32, #tpu.memory_space<vmem>>, vector<16x32xf32>
    %1 = arith.mulf %0, %0 : vector<16x32xf32>
    %cst = arith.constant dense<0.000000e+00> : vector<16xf32>
    %2 = vector.multi_reduction <add>, %1, %cst [1] : vector<16x32xf32> to vector<16xf32>
    %3 = vector.shape_cast %2 : vector<16xf32> to vector<16x1xf32>
    %cst_1 = arith.constant 3.125000e-02 : f32
    %4 = vector.broadcast %cst_1 : f32 to vector<16x1xf32>
    %5 = arith.mulf %3, %4 : vector<16x1xf32>
    %cst_2 = arith.constant 9.99999993E-9 : f32
    %6 = vector.broadcast %cst_2 : f32 to vector<16x1xf32>
    %7 = arith.addf %5, %6 : vector<16x1xf32>
    %8 = math.rsqrt %7 : vector<16x1xf32>
    %c0_3 = arith.constant 0 : index
    %c0_4 = arith.constant 0 : index
    %9 = vector.load %arg2[%c0_3, %c0_4] : memref<1x32xf32, #tpu.memory_space<vmem>>, vector<1x32xf32>
    %c0_5 = arith.constant 0 : index
    %c0_6 = arith.constant 0 : index
    %10 = vector.load %arg1[%c0_5, %c0_6] : memref<16x32xf32, #tpu.memory_space<vmem>>, vector<16x32xf32>
    %11 = vector.broadcast %8 : vector<16x1xf32> to vector<16x32xf32>
    %12 = arith.mulf %10, %11 : vector<16x32xf32>
    %13 = vector.broadcast %9 : vector<1x32xf32> to vector<16x32xf32>
    %14 = arith.mulf %12, %13 : vector<16x32xf32>
    %c0_7 = arith.constant 0 : index
    %c0_8 = arith.constant 0 : index
    %15 = vector.load %arg3[%c0_7, %c0_8] : memref<16x32xf32, #tpu.memory_space<vmem>>, vector<16x32xf32>
    tpu.vector_store %arg3[%c0_7, %c0_8], %14 {strides = array<i32>} : memref<16x32xf32, #tpu.memory_space<vmem>>, vector<16x32xf32>,
    return
  }
  func.func @transform_0(%arg0: i32) -> (i32, i32) {
    %c0_i32 = arith.constant 0 : i32
    %c0_i32_0 = arith.constant 0 : i32
    return %arg0, %c0_i32 : i32, i32
  }
  func.func @transform_1(%arg0: i32) -> (i32, i32) {
    %c0_i32 = arith.constant 0 : i32
    %c0_i32_0 = arith.constant 0 : i32
    %c0_i32_1 = arith.constant 0 : i32
    return %c0_i32, %c0_i32_0 : i32, i32
  }
  func.func @transform_2(%arg0: i32) -> (i32, i32) {
    %c0_i32 = arith.constant 0 : i32
    %c0_i32_0 = arith.constant 0 : i32
    return %arg0, %c0_i32 : i32, i32
  }
}

</mosaic_0001>

<bundles_post_ra>
// kernel: tpu_custom_call.1
= control target key start
LH: loop header
LB: loop body
LE: loop exit
PB: predicated region body
PF: predicated region fallthrough
CT: control target
= control target key end

     0   :  { %7 = vsyncpa [#allocation3], 0  ;;  %s234_s0 = inlined_call_operand.hbm [shape: f32[16,32], index: 0, kind: input, shape index: {}]   ;;  %s235_s1 = inlined_call_operand.hbm [shape: f32[1,32], index: 1, kind: input, shape index: {}]   ;;  %s236_s2 = inlined_call_operand.hbm [shape: f32[16,32], index: 2, kind: output, shape index: {}]  }
   0x1   :  { %8 = vsyncpa [#allocation6], 0 }
   0x2   :  { %9 = vsyncpa [#allocation4], 0  ;;  %s14_s11 = sshll.u32 %s234_s0, 4  ;;  %s195_s12 = smov [#allocation2]   ;;  %s15_s11 = int_to_ptr.hbm [resolvable:$true] %s14_s11 }
   0x3   :  { %s16_s13 = sshll.u32 %s195_s12, 4  ;;  %s28_s16 = sshll.u32 %s235_s1, 4  ;;  %s17_s13 = int_to_ptr.vmem [resolvable:$true] %s16_s13  ;;  %s29_s16 = int_to_ptr.hbm [resolvable:$true] %s28_s16 }
   0x4   :  { %s196_s17 = smov 128   ;;  %s197_s18 = smov 8  }
   0x5   :  { %22 = dma.hbm_to_vmem [thread:$0]  %s15_s11, 256, %s17_s13, [#allocation3], %s196_s17, %s196_s17, %s197_s18  }
   0x6   :  { %s198_s19 = smov [#allocation5]  }
   0x7   :  { %s30_s20 = sshll.u32 %s198_s19, 4  ;;  %s31_s20 = int_to_ptr.vmem [resolvable:$true] %s30_s20 }
   0x8   :  { %33 = dma.hbm_to_vmem [thread:$0]  %s29_s16, 16, %s31_s20, [#allocation6]  }
   0x9   :  { %189 = dma.done.wait [#allocation3], 256  }
   0xa   :  { %190 = vsyncadd [#allocation3], 4294967040 }
   0xb   :  { %191 = dma.done.wait [#allocation6], 16  }
   0xc   :  { %192 = vsyncadd [#allocation6], 4294967280  ;;  %v42_v0 = vld [vmem:[#allocation2] sm:$0xff]  ;;  %vm46_vm0 = vcmask 261120   ;;  %v43_v2 = vld [vmem:[#allocation2 + $0x8] sm:$0xff]  ;;  %s199_s0 = smov [#allocation7]  }
   0xd   :  { %v44_v1 = vmul.f32 %v42_v0, %v42_v0  ;;  %v45_v4 = vmul.f32 %v43_v2, %v43_v2  ;;  %v112_v20 = vld [vmem:[#allocation5] ss:$0 sm:$0xff]  ;;  %s91_s1 = sshll.u32 %s199_s0, 4  ;;  %s93_s23 = sshll.u32 %s236_s2, 4  ;;  %s92_s1 = int_to_ptr.vmem [resolvable:$true] %s91_s1  ;;  %s94_s23 = int_to_ptr.hbm [resolvable:$true] %s93_s23 }
   0xf   :  { %v47_v3 = vsel %vm46_vm0, %v44_v1, 0.0  ;;  %v50_v5 = vsel %vm46_vm0, %v45_v4, 0.0 }
  0x10   :  { %48 = vadd.xlane.f32.xlu0 %v47_v3 }
  0x18   :  { %51 = vadd.xlane.f32.xlu0 %v50_v5 }
  0x83   :  { %v49_v6 = vpop.xlane.xlu0 %48 }
  0x84   :  { %v53_v7 = vmul.f32 0.03125, %v49_v6 }
  0x86   :  { %v55_v8 = vadd.f32 1e-08, %v53_v7 }
  0x88   :  { %113 = vrsqrt.f32 %v55_v8  ;;  %vm63_vm2 = vweird.f32 %v55_v8 }
  0x8b   :  { %v52_v9 = vpop.xlane.xlu0 %51 }
  0x8c   :  { %v54_v10 = vmul.f32 0.03125, %v52_v9 }
  0x8e   :  { %v114_v11 = vpop.eup %113  ;;  %v56_v12 = vadd.f32 1e-08, %v54_v10 }
  0x8f   :  { %v58_v13 = vmul.f32 %v114_v11, %v55_v8  ;;  %vm64_vm1 = vweird.f32 %v114_v11 }
  0x90   :  { %115 = vrsqrt.f32 %v56_v12  ;;  %vm65_vm3 = vmor %vm63_vm2, %vm64_vm1  ;;  %vm73_vm5 = vweird.f32 %v56_v12 }
  0x91   :  { %v59_v14 = vmul.f32 %v114_v11, %v58_v13 }
  0x93   :  { %v60_v15 = vmul.f32 0.5, %v59_v14 }
  0x95   :  { %v61_v16 = vsub.f32 1.5, %v60_v15 }
  0x96   :  { %v116_v17 = vpop.eup %115 }
  0x97   :  { %v62_v18 = vmul.f32 %v114_v11, %v61_v16  ;;  %v68_v19 = vmul.f32 %v116_v17, %v56_v12  ;;  %vm74_vm4 = vweird.f32 %v116_v17 }
  0x98   :  { %vm75_vm6 = vmor %vm73_vm5, %vm74_vm4 }
  0x99   :  { %v66_v21 = vsel %vm65_vm3, %v114_v11, %v62_v18  ;;  %v69_v22 = vmul.f32 %v116_v17, %v68_v19 }
  0x9a   :  { %v78_v23 = vmul.f32 %v66_v21, %v42_v0 }
  0x9b   :  { %v70_v24 = vmul.f32 0.5, %v69_v22 }
  0x9c   :  { %v83_v25 = vmul.f32 %v112_v20, %v78_v23 }
  0x9d   :  { %v71_v26 = vsub.f32 1.5, %v70_v24 }
  0x9e   :  { %85 = vst.msk [vmem:[#allocation7] sm:$0xff] %vm46_vm0, %v83_v25 }
  0x9f   :  { %v72_v27 = vmul.f32 %v116_v17, %v71_v26 }
  0xa1   :  { %v76_v28 = vsel %vm75_vm6, %v116_v17, %v72_v27 }
  0xa2   :  { %v79_v29 = vmul.f32 %v76_v28, %v43_v2 }
  0xa4   :  { %v84_v30 = vmul.f32 %v112_v20, %v79_v29 }
  0xa6   :  { %86 = vst.msk [vmem:[#allocation7 + $0x8] sm:$0xff] %vm46_vm0, %v84_v30 }
  0xa7   :  { %99 = dma.vmem_to_hbm [thread:$0]  %s92_s1, 256, %s94_s23, [#allocation4], %s196_s17, %s196_s17, %s197_s18  }
  0xa8   :  { %193 = dma.done.wait [#allocation4], 256  }
  0xa9   :  { %194 = vsyncadd [#allocation4], 4294967040 }
  0xaa   :  { %104 = vsyncpa [#allocation3], 1 }
  0xab   :  { %105 = vsyncpa [#allocation6], 1 }
  0xac   :  { %106 = vsyncpa [#allocation4], 1 }

</bundles_post_ra>
